<compile_context>
chip_gen: v5e
topology: v5e:2x2
jax: 0.10.0
libtpu: 0.0.40
codegen_flags: <defaults>
</compile_context>

<pallas_src>
import functools

import jax
import jax.numpy as jnp
from jax import lax
from jax.experimental import pallas as pl
from jax.experimental.pallas import tpu as pltpu


def _round_up(x: int, m: int) -> int:
    return ((x + m - 1) // m) * m


def _heads_per_block(n_head: int, dh: int) -> int:
    """Pack heads per grid step so the packed head dim is lane-dense (128) if possible."""
    hp = min(n_head, max(1, 128 // dh))
    while n_head % hp:
        hp -= 1
    # The ctx output block's minor dim must be a multiple of 128 or the full model dim.
    if (hp * dh) % 128 != 0 and hp != n_head:
        hp = n_head
    return hp


def _mha_kernel(xq_ref, xkv_ref, wq_ref, bq_ref, wk_ref, wv_ref, bv_ref,
                ctx_ref, qk_ref, k_scr, v_scr, *,
                head_dim: int, heads_per_block: int, t_real: int, compute_dtype):
    """One grid step == (batch b, head-group hg, query tile qt)."""
    qt = pl.program_id(2)
    cdt = compute_dtype
    dh = head_dim
    hp = heads_per_block

    # K/V projections for this (b, head-group): computed once (qt == 0, query-tile axis
    # is innermost) and cached in VMEM scratch for every query tile of this head-group.
    @pl.when(qt == 0)
    def _():
        xkv = xkv_ref[0]                                            # (T_pad, D) compute dtype
        k_scr[...] = jnp.dot(xkv, wk_ref[0],
                             preferred_element_type=jnp.float32).astype(k_scr.dtype)
        v_scr[...] = (jnp.dot(xkv, wv_ref[0],
                              preferred_element_type=jnp.float32)
                      + bv_ref[0]).astype(v_scr.dtype)

    # Q projection for this query tile; the dh**-0.5 score scale is folded into wq/bq.
    q = (jnp.dot(xq_ref[0], wq_ref[0], preferred_element_type=jnp.float32)
         + bq_ref[0]).astype(cdt)                                   # (TQ, hp*dh)
    k = k_scr[...]                                                  # (T_pad, hp*dh)
    v = v_scr[...]                                                  # (T_pad, hp*dh)
    t_pad = k.shape[0]

    for j in range(hp):                                             # static sub-head loop
        sl = slice(j * dh, (j + 1) * dh)
        # scores: contract over dh on both sides — no explicit k transpose.
        s = lax.dot_general(q[:, sl], k[:, sl],
                            dimension_numbers=(((1,), (1,)), ((), ())),
                            preferred_element_type=jnp.float32)     # (TQ, T_pad) f32
        qk_ref[0, j] = s                                            # raw pre-softmax scores

        if t_pad != t_real:  # static condition: mask padded key columns for the softmax
            col = lax.broadcasted_iota(jnp.int32, s.shape, 1)
            s = jnp.where(col < t_real, s, -jnp.inf)

        # softmax in f32; approximate reciprocal runs on the EUP slot (off the VALU path).
        m = jnp.max(s, axis=-1, keepdims=True)
        e = jnp.exp(s - m)
        p = e * pl.reciprocal(jnp.sum(e, axis=-1, keepdims=True), approx=True)

        ctx_ref[0, :, sl] = jnp.dot(p.astype(cdt), v[:, sl],
                                    preferred_element_type=jnp.float32
                                    ).astype(ctx_ref.dtype)          # (TQ, dh)


def multi_head_attention(x, params, n_head: int, *, block_q=None,
                         compute_dtype=jnp.bfloat16):
    """Whisper MultiHeadAttention forward (pure self-attention path)."""
    wq, bq, wk, wv, bv, wo, bo = params
    B, T, D = x.shape
    assert D % n_head == 0
    dh = D // n_head
    hp = _heads_per_block(n_head, dh)
    n_hg = n_head // hp
    hd = hp * dh
    cdt = compute_dtype

    if block_q is None:
        block_q = 256                    # big tiles: fewer grid steps, better HBM roofline
    block_q = min(_round_up(block_q, 8), _round_up(T, 8))
    t_pad = _round_up(T, block_q)
    n_qt = t_pad // block_q

    # Pad the sequence (padded key columns are masked in-kernel, padded rows sliced off
    # the outputs) and cast x once so the resident (T, D) block is in the compute dtype.
    x_p = x
    if t_pad != T:
        x_p = jnp.pad(x_p, ((0, 0), (0, t_pad - T), (0, 0)))
    x_p = x_p.astype(cdt)

    # One-time head-group-major relayout of the QKV weights; fold dh**-0.5 into wq/bq.
    scale = dh ** -0.5
    wq_h = (wq * scale).reshape(D, n_hg, hd).transpose(1, 0, 2).astype(cdt)
    wk_h = wk.reshape(D, n_hg, hd).transpose(1, 0, 2).astype(cdt)
    wv_h = wv.reshape(D, n_hg, hd).transpose(1, 0, 2).astype(cdt)
    bq_h = (bq * scale).reshape(n_hg, 1, hd).astype(jnp.float32)
    bv_h = bv.reshape(n_hg, 1, hd).astype(jnp.float32)

    kernel = functools.partial(_mha_kernel, head_dim=dh, heads_per_block=hp,
                               t_real=T, compute_dtype=cdt)

    grid_spec = pltpu.PrefetchScalarGridSpec(
        num_scalar_prefetch=0,
        grid=(B, n_hg, n_qt),   # query-tile innermost -> K/V computed once per head-group
        in_specs=[
            pl.BlockSpec((1, block_q, D), lambda b, hg, qt: (b, qt, 0)),   # query rows
            pl.BlockSpec((1, t_pad, D),   lambda b, hg, qt: (b, 0, 0)),    # key/value rows
            pl.BlockSpec((1, D, hd),      lambda b, hg, qt: (hg, 0, 0)),   # wq head-group
            pl.BlockSpec((1, 1, hd),      lambda b, hg, qt: (hg, 0, 0)),   # bq head-group
            pl.BlockSpec((1, D, hd),      lambda b, hg, qt: (hg, 0, 0)),   # wk head-group
            pl.BlockSpec((1, D, hd),      lambda b, hg, qt: (hg, 0, 0)),   # wv head-group
            pl.BlockSpec((1, 1, hd),      lambda b, hg, qt: (hg, 0, 0)),   # bv head-group
        ],
        out_specs=[
            pl.BlockSpec((1, block_q, hd),        lambda b, hg, qt: (b, qt, hg)),    # ctx
            pl.BlockSpec((1, hp, block_q, t_pad), lambda b, hg, qt: (b, hg, qt, 0)),  # qk
        ],
        scratch_shapes=[
            pltpu.VMEM((t_pad, hd), cdt),   # per-head-group K cache
            pltpu.VMEM((t_pad, hd), cdt),   # per-head-group V cache
        ],
    )

    # Per-generation VMEM budget (v7x has 64 MiB/TC vs 128 MiB on v5e/v6e).
    vmem_limit = 32 * 1024 * 1024
    try:
        cap = getattr(pltpu.get_tpu_info(), "vmem_capacity_bytes", None)
        if cap:
            vmem_limit = min((int(cap) * 3) // 4, 100 * 1024 * 1024)
    except Exception:
        pass

    ctx, qk = pl.pallas_call(
        kernel,
        grid_spec=grid_spec,
        out_shape=(
            jax.ShapeDtypeStruct((B, t_pad, D), jnp.float32),
            jax.ShapeDtypeStruct((B, n_head, t_pad, t_pad), jnp.float32),
        ),
        compiler_params=pltpu.CompilerParams(
            dimension_semantics=("parallel", "parallel", "arbitrary"),
            vmem_limit_bytes=vmem_limit,
        ),
    )(x_p, x_p, wq_h, bq_h, wk_h, wv_h, bv_h)

    if t_pad != T:
        ctx = ctx[:, :T, :]
        qk = qk[:, :, :T, :T]

    # Output projection as a plain (near-roofline) XLA matmul in f32.
    out = jnp.dot(ctx, wo.astype(jnp.float32),
                  preferred_element_type=jnp.float32) + bo.astype(jnp.float32)
    return out, qk


def _reference_mha(x, params, n_head: int):
    # Plain-JAX reference mirroring the PyTorch forward exactly.
    wq, bq, wk, wv, bv, wo, bo = params
    B, T, D = x.shape
    dh = D // n_head
    scale = dh ** (-0.25)
    q = x @ wq + bq
    k = x @ wk
    v = x @ wv + bv
    q = q.reshape(B, T, n_head, dh).transpose(0, 2, 1, 3) * scale
    k = k.reshape(B, T, n_head, dh).transpose(0, 2, 3, 1) * scale
    v = v.reshape(B, T, n_head, dh).transpose(0, 2, 1, 3)
    qk = (q @ k).astype(jnp.float32)
    w = jax.nn.softmax(qk, axis=-1)
    ctx = (w @ v).transpose(0, 2, 1, 3).reshape(B, T, D)
    return ctx @ wo + bo, qk


if __name__ == "__main__":
    B, T, D, H = 2, 16, 32, 4  # batch, n_ctx, n_state, n_head (dh = 8)

    key = jax.random.PRNGKey(0)
    ks = jax.random.split(key, 8)
    s = 1.0 / jnp.sqrt(D)
    params = (
        jax.random.normal(ks[0], (D, D), jnp.float32) * s,   # wq  (D_in, D_out)
        jax.random.normal(ks[1], (D,),   jnp.float32) * s,   # bq
        jax.random.normal(ks[2], (D, D), jnp.float32) * s,   # wk (no bias)
        jax.random.normal(ks[3], (D, D), jnp.float32) * s,   # wv
        jax.random.normal(ks[4], (D,),   jnp.float32) * s,   # bv
        jax.random.normal(ks[5], (D, D), jnp.float32) * s,   # wo
        jax.random.normal(ks[6], (D,),   jnp.float32) * s,   # bo
    )
    x = jax.random.normal(ks[7], (B, T, D), jnp.float32)

    ref_out, ref_qk = _reference_mha(x, params, H)

    # 1) f32 compute path, multiple query tiles (exercises K/V scratch reuse across qt).
    out, qk = multi_head_attention(x, params, H, block_q=8, compute_dtype=jnp.float32)
    jax.block_until_ready((out, qk))
    assert jnp.allclose(qk, ref_qk, atol=3e-2, rtol=3e-2), "qk mismatch (f32)"
    assert jnp.allclose(out, ref_out, atol=5e-2, rtol=5e-2), "out mismatch (f32)"

    # 2) default bf16 MXU-operand path (f32 accumulation / softmax / outputs).
    out_bf, qk_bf = multi_head_attention(x, params, H, block_q=8)
    jax.block_until_ready((out_bf, qk_bf))
    assert jnp.allclose(qk_bf, ref_qk, atol=2e-1, rtol=2e-1), "qk mismatch (bf16)"
    assert jnp.allclose(out_bf, ref_out, atol=2e-1, rtol=2e-1), "out mismatch (bf16)"

    # 3) T not a multiple of block_q / 8 -> padding + padded-key-column masking path.
    Tp = 12
    xp = x[:, :Tp, :]
    ref_out_p, ref_qk_p = _reference_mha(xp, params, H)
    out_p, qk_p = multi_head_attention(xp, params, H, block_q=8,
                                       compute_dtype=jnp.float32)
    jax.block_until_ready((out_p, qk_p))
    assert jnp.allclose(qk_p, ref_qk_p, atol=3e-2, rtol=3e-2), "qk mismatch (padded)"
    assert jnp.allclose(out_p, ref_out_p, atol=5e-2, rtol=5e-2), "out mismatch (padded)"

    print("KERNEL_OK")
</pallas_src>

<mosaic_0001>
module attributes {stable_mosaic.version = 11 : i64} {
  func.func @_mha_kernel(%arg0: i32, %arg1: i32, %arg2: i32, %arg3: memref<1x8x32xf32, #tpu.memory_space<vmem>>, %arg4: memref<1x16x32xf32, #tpu.memory_space<vmem>>, %arg5: memref<1x32x32xf32, #tpu.memory_space<vmem>>, %arg6: memref<1x1x32xf32, #tpu.memory_space<vmem>>, %arg7: memref<1x32x32xf32, #tpu.memory_space<vmem>>, %arg8: memref<1x32x32xf32, #tpu.memory_space<vmem>>, %arg9: memref<1x1x32xf32, #tpu.memory_space<vmem>>, %arg10: memref<1x8x32xf32, #tpu.memory_space<vmem>>, %arg11: memref<1x4x8x16xf32, #tpu.memory_space<vmem>>, %arg12: memref<16x32xf32, #tpu.memory_space<vmem>>, %arg13: memref<16x32xf32, #tpu.memory_space<vmem>>) attributes {dimension_semantics = [#tpu.dimension_semantics<parallel>, #tpu.dimension_semantics<parallel>, #tpu.dimension_semantics<arbitrary>], iteration_bounds = array<i64: 2, 1, 2>, scalar_prefetch = 0 : i64, scratch_operands = 2 : i64, tpu.core_type = #tpu.core_type<tc>, window_params = [{transform_indices = @transform_0, window_bounds = array<i64: 1, 8, 32>}, {transform_indices = @transform_1, window_bounds = array<i64: 1, 16, 32>}, {transform_indices = @transform_2, window_bounds = array<i64: 1, 32, 32>}, {transform_indices = @transform_3, window_bounds = array<i64: 1, 1, 32>}, {transform_indices = @transform_4, window_bounds = array<i64: 1, 32, 32>}, {transform_indices = @transform_5, window_bounds = array<i64: 1, 32, 32>}, {transform_indices = @transform_6, window_bounds = array<i64: 1, 1, 32>}, {transform_indices = @transform_7, window_bounds = array<i64: 1, 8, 32>}, {transform_indices = @transform_8, window_bounds = array<i64: 1, 4, 8, 16>}]} {
    %c0_i32 = arith.constant 0 : i32
    %0 = arith.cmpi eq, %arg2, %c0_i32 : i32
    %1 = arith.extui %0 : i1 to i32
    %c0_i32_0 = arith.constant 0 : i32
    %2 = arith.cmpi ne, %1, %c0_i32_0 : i32
    scf.if %2 {
      %c0_51 = arith.constant 0 : index
      %c0_52 = arith.constant 0 : index
      %c0_53 = arith.constant 0 : index
      %98 = vector.load %arg4[%c0_51, %c0_52, %c0_53] : memref<1x16x32xf32, #tpu.memory_space<vmem>>, vector<1x16x32xf32>
      %99 = vector.shape_cast %98 : vector<1x16x32xf32> to vector<16x32xf32>
      %c0_54 = arith.constant 0 : index
      %c0_55 = arith.constant 0 : index
      %c0_56 = arith.constant 0 : index
      %100 = vector.load %arg7[%c0_54, %c0_55, %c0_56] : memref<1x32x32xf32, #tpu.memory_space<vmem>>, vector<1x32x32xf32>
      %101 = vector.shape_cast %100 : vector<1x32x32xf32> to vector<32x32xf32>
      %cst_57 = arith.constant dense<0.000000e+00> : vector<16x32xf32>
      %102 = tpu.matmul %99, %101, %cst_57 {dimension_numbers = #tpu.dot_dimension_numbers<[1], [0], [0], [1], [0, 0, 1, 1], [], []>} : vector<16x32xf32>, vector<32x32xf32>, vector<16x32xf32> -> vector<16x32xf32>
      %c0_58 = arith.constant 0 : index
      %c0_59 = arith.constant 0 : index
      %103 = vector.load %arg12[%c0_58, %c0_59] : memref<16x32xf32, #tpu.memory_space<vmem>>, vector<16x32xf32>
      tpu.vector_store %arg12[%c0_58, %c0_59], %102 {strides = array<i32>} : memref<16x32xf32, #tpu.memory_space<vmem>>, vector<16x32xf32>,
      %c0_60 = arith.constant 0 : index
      %c0_61 = arith.constant 0 : index
      %c0_62 = arith.constant 0 : index
      %104 = vector.load %arg8[%c0_60, %c0_61, %c0_62] : memref<1x32x32xf32, #tpu.memory_space<vmem>>, vector<1x32x32xf32>
      %105 = vector.shape_cast %104 : vector<1x32x32xf32> to vector<32x32xf32>
      %cst_63 = arith.constant dense<0.000000e+00> : vector<16x32xf32>
      %106 = tpu.matmul %99, %105, %cst_63 {dimension_numbers = #tpu.dot_dimension_numbers<[1], [0], [0], [1], [0, 0, 1, 1], [], []>} : vector<16x32xf32>, vector<32x32xf32>, vector<16x32xf32> -> vector<16x32xf32>
      %c0_64 = arith.constant 0 : index
      %c0_65 = arith.constant 0 : index
      %c0_66 = arith.constant 0 : index
      %107 = vector.load %arg9[%c0_64, %c0_65, %c0_66] : memref<1x1x32xf32, #tpu.memory_space<vmem>>, vector<1x1x32xf32>
      %108 = vector.shape_cast %107 : vector<1x1x32xf32> to vector<1x32xf32>
      %109 = vector.broadcast %108 : vector<1x32xf32> to vector<16x32xf32>
      %110 = arith.addf %106, %109 : vector<16x32xf32>
      %c0_67 = arith.constant 0 : index
      %c0_68 = arith.constant 0 : index
      %111 = vector.load %arg13[%c0_67, %c0_68] : memref<16x32xf32, #tpu.memory_space<vmem>>, vector<16x32xf32>
      tpu.vector_store %arg13[%c0_67, %c0_68], %110 {strides = array<i32>} : memref<16x32xf32, #tpu.memory_space<vmem>>, vector<16x32xf32>,
    } else {
    }
    %c0 = arith.constant 0 : index
    %c0_1 = arith.constant 0 : index
    %c0_2 = arith.constant 0 : index
    %3 = vector.load %arg3[%c0, %c0_1, %c0_2] : memref<1x8x32xf32, #tpu.memory_space<vmem>>, vector<1x8x32xf32>
    %4 = vector.shape_cast %3 : vector<1x8x32xf32> to vector<8x32xf32>
    %c0_3 = arith.constant 0 : index
    %c0_4 = arith.constant 0 : index
    %c0_5 = arith.constant 0 : index
    %5 = vector.load %arg5[%c0_3, %c0_4, %c0_5] : memref<1x32x32xf32, #tpu.memory_space<vmem>>, vector<1x32x32xf32>
    %6 = vector.shape_cast %5 : vector<1x32x32xf32> to vector<32x32xf32>
    %cst = arith.constant dense<0.000000e+00> : vector<8x32xf32>
    %7 = tpu.matmul %4, %6, %cst {dimension_numbers = #tpu.dot_dimension_numbers<[1], [0], [0], [1], [0, 0, 1, 1], [], []>} : vector<8x32xf32>, vector<32x32xf32>, vector<8x32xf32> -> vector<8x32xf32>
    %c0_6 = arith.constant 0 : index
    %c0_7 = arith.constant 0 : index
    %c0_8 = arith.constant 0 : index
    %8 = vector.load %arg6[%c0_6, %c0_7, %c0_8] : memref<1x1x32xf32, #tpu.memory_space<vmem>>, vector<1x1x32xf32>
    %9 = vector.shape_cast %8 : vector<1x1x32xf32> to vector<1x32xf32>
    %10 = vector.broadcast %9 : vector<1x32xf32> to vector<8x32xf32>
    %11 = arith.addf %7, %10 : vector<8x32xf32>
    %c0_9 = arith.constant 0 : index
    %c0_10 = arith.constant 0 : index
    %12 = vector.load %arg12[%c0_9, %c0_10] : memref<16x32xf32, #tpu.memory_space<vmem>>, vector<16x32xf32>
    %c0_11 = arith.constant 0 : index
    %c0_12 = arith.constant 0 : index
    %13 = vector.load %arg13[%c0_11, %c0_12] : memref<16x32xf32, #tpu.memory_space<vmem>>, vector<16x32xf32>
    %14 = vector.extract_strided_slice %11 {offsets = [0, 0], sizes = [8, 8], strides = [1, 1]} : vector<8x32xf32> to vector<8x8xf32>
    %15 = vector.extract_strided_slice %12 {offsets = [0, 0], sizes = [16, 8], strides = [1, 1]} : vector<16x32xf32> to vector<16x8xf32>
    %cst_13 = arith.constant dense<0.000000e+00> : vector<8x16xf32>
    %16 = tpu.matmul %14, %15, %cst_13 {dimension_numbers = #tpu.dot_dimension_numbers<[1], [1], [0], [0], [0, 0, 1, 0], [], []>} : vector<8x8xf32>, vector<16x8xf32>, vector<8x16xf32> -> vector<8x16xf32>
    %c0_14 = arith.constant 0 : index
    %c0_15 = arith.constant 0 : index
    %c0_16 = arith.constant 0 : index
    %c0_17 = arith.constant 0 : index
    %17 = vector.load %arg11[%c0_14, %c0_15, %c0_16, %c0_17] : memref<1x4x8x16xf32, #tpu.memory_space<vmem>>, vector<1x1x8x16xf32>
    %18 = vector.shape_cast %17 : vector<1x1x8x16xf32> to vector<8x16xf32>
    %19 = vector.shape_cast %16 : vector<8x16xf32> to vector<1x1x8x16xf32>
    tpu.vector_store %arg11[%c0_14, %c0_15, %c0_16, %c0_17], %19 {strides = array<i32>} : memref<1x4x8x16xf32, #tpu.memory_space<vmem>>, vector<1x1x8x16xf32>,
    %cst_18 = arith.constant dense<0xFF800000> : vector<8xf32>
    %20 = vector.multi_reduction <maximumf>, %16, %cst_18 [1] : vector<8x16xf32> to vector<8xf32>
    %21 = vector.shape_cast %20 : vector<8xf32> to vector<8x1xf32>
    %22 = vector.broadcast %21 : vector<8x1xf32> to vector<8x16xf32>
    %23 = arith.subf %16, %22 : vector<8x16xf32>
    %24 = math.exp %23 : vector<8x16xf32>
    %cst_19 = arith.constant dense<0.000000e+00> : vector<8xf32>
    %25 = vector.multi_reduction <add>, %24, %cst_19 [1] : vector<8x16xf32> to vector<8xf32>
    %26 = vector.shape_cast %25 : vector<8xf32> to vector<8x1xf32>
    %27 = tpu.reciprocal %26 {approx = true} : vector<8x1xf32> -> vector<8x1xf32>
    %28 = vector.broadcast %27 : vector<8x1xf32> to vector<8x16xf32>
    %29 = arith.mulf %24, %28 : vector<8x16xf32>
    %30 = vector.extract_strided_slice %13 {offsets = [0, 0], sizes = [16, 8], strides = [1, 1]} : vector<16x32xf32> to vector<16x8xf32>
    %cst_20 = arith.constant dense<0.000000e+00> : vector<8x8xf32>
    %31 = tpu.matmul %29, %30, %cst_20 {dimension_numbers = #tpu.dot_dimension_numbers<[1], [0], [0], [1], [0, 0, 1, 1], [], []>} : vector<8x16xf32>, vector<16x8xf32>, vector<8x8xf32> -> vector<8x8xf32>
    %c0_21 = arith.constant 0 : index
    %c0_22 = arith.constant 0 : index
    %c0_23 = arith.constant 0 : index
    %32 = vector.load %arg10[%c0_21, %c0_22, %c0_23] : memref<1x8x32xf32, #tpu.memory_space<vmem>>, vector<1x8x8xf32>
    %33 = vector.shape_cast %32 : vector<1x8x8xf32> to vector<8x8xf32>
    %34 = vector.shape_cast %31 : vector<8x8xf32> to vector<1x8x8xf32>
    tpu.vector_store %arg10[%c0_21, %c0_22, %c0_23], %34 {strides = array<i32>} : memref<1x8x32xf32, #tpu.memory_space<vmem>>, vector<1x8x8xf32>,
    %35 = vector.extract_strided_slice %11 {offsets = [0, 8], sizes = [8, 8], strides = [1, 1]} : vector<8x32xf32> to vector<8x8xf32>
    %36 = vector.extract_strided_slice %12 {offsets = [0, 8], sizes = [16, 8], strides = [1, 1]} : vector<16x32xf32> to vector<16x8xf32>
    %cst_24 = arith.constant dense<0.000000e+00> : vector<8x16xf32>
    %37 = tpu.matmul %35, %36, %cst_24 {dimension_numbers = #tpu.dot_dimension_numbers<[1], [1], [0], [0], [0, 0, 1, 0], [], []>} : vector<8x8xf32>, vector<16x8xf32>, vector<8x16xf32> -> vector<8x16xf32>
    %c0_25 = arith.constant 0 : index
    %c1 = arith.constant 1 : index
    %c0_26 = arith.constant 0 : index
    %c0_27 = arith.constant 0 : index
    %38 = vector.load %arg11[%c0_25, %c1, %c0_26, %c0_27] : memref<1x4x8x16xf32, #tpu.memory_space<vmem>>, vector<1x1x8x16xf32>
    %39 = vector.shape_cast %38 : vector<1x1x8x16xf32> to vector<8x16xf32>
    %40 = vector.shape_cast %37 : vector<8x16xf32> to vector<1x1x8x16xf32>
    tpu.vector_store %arg11[%c0_25, %c1, %c0_26, %c0_27], %40 {strides = array<i32>} : memref<1x4x8x16xf32, #tpu.memory_space<vmem>>, vector<1x1x8x16xf32>,
    %cst_28 = arith.constant dense<0xFF800000> : vector<8xf32>
    %41 = vector.multi_reduction <maximumf>, %37, %cst_28 [1] : vector<8x16xf32> to vector<8xf32>
    %42 = vector.shape_cast %41 : vector<8xf32> to vector<8x1xf32>
    %43 = vector.broadcast %42 : vector<8x1xf32> to vector<8x16xf32>
    %44 = arith.subf %37, %43 : vector<8x16xf32>
    %45 = math.exp %44 : vector<8x16xf32>
    %cst_29 = arith.constant dense<0.000000e+00> : vector<8xf32>
    %46 = vector.multi_reduction <add>, %45, %cst_29 [1] : vector<8x16xf32> to vector<8xf32>
    %47 = vector.shape_cast %46 : vector<8xf32> to vector<8x1xf32>
    %48 = tpu.reciprocal %47 {approx = true} : vector<8x1xf32> -> vector<8x1xf32>
    %49 = vector.broadcast %48 : vector<8x1xf32> to vector<8x16xf32>
    %50 = arith.mulf %45, %49 : vector<8x16xf32>
    %51 = vector.extract_strided_slice %13 {offsets = [0, 8], sizes = [16, 8], strides = [1, 1]} : vector<16x32xf32> to vector<16x8xf32>
    %cst_30 = arith.constant dense<0.000000e+00> : vector<8x8xf32>
    %52 = tpu.matmul %50, %51, %cst_30 {dimension_numbers = #tpu.dot_dimension_numbers<[1], [0], [0], [1], [0, 0, 1, 1], [], []>} : vector<8x16xf32>, vector<16x8xf32>, vector<8x8xf32> -> vector<8x8xf32>
    %c0_31 = arith.constant 0 : index
    %c0_32 = arith.constant 0 : index
    %c8 = arith.constant 8 : index
    %53 = vector.load %arg10[%c0_31, %c0_32, %c8] : memref<1x8x32xf32, #tpu.memory_space<vmem>>, vector<1x8x8xf32>
    %54 = vector.shape_cast %53 : vector<1x8x8xf32> to vector<8x8xf32>
    %55 = vector.shape_cast %52 : vector<8x8xf32> to vector<1x8x8xf32>
    tpu.vector_store %arg10[%c0_31, %c0_32, %c8], %55 {strides = array<i32>} : memref<1x8x32xf32, #tpu.memory_space<vmem>>, vector<1x8x8xf32>,
    %56 = vector.extract_strided_slice %11 {offsets = [0, 16], sizes = [8, 8], strides = [1, 1]} : vector<8x32xf32> to vector<8x8xf32>
    %57 = vector.extract_strided_slice %12 {offsets = [0, 16], sizes = [16, 8], strides = [1, 1]} : vector<16x32xf32> to vector<16x8xf32>
    %cst_33 = arith.constant dense<0.000000e+00> : vector<8x16xf32>
    %58 = tpu.matmul %56, %57, %cst_33 {dimension_numbers = #tpu.dot_dimension_numbers<[1], [1], [0], [0], [0, 0, 1, 0], [], []>} : vector<8x8xf32>, vector<16x8xf32>, vector<8x16xf32> -> vector<8x16xf32>
    %c0_34 = arith.constant 0 : index
    %c2 = arith.constant 2 : index
    %c0_35 = arith.constant 0 : index
    %c0_36 = arith.constant 0 : index
    %59 = vector.load %arg11[%c0_34, %c2, %c0_35, %c0_36] : memref<1x4x8x16xf32, #tpu.memory_space<vmem>>, vector<1x1x8x16xf32>
    %60 = vector.shape_cast %59 : vector<1x1x8x16xf32> to vector<8x16xf32>
    %61 = vector.shape_cast %58 : vector<8x16xf32> to vector<1x1x8x16xf32>
    tpu.vector_store %arg11[%c0_34, %c2, %c0_35, %c0_36], %61 {strides = array<i32>} : memref<1x4x8x16xf32, #tpu.memory_space<vmem>>, vector<1x1x8x16xf32>,
    %cst_37 = arith.constant dense<0xFF800000> : vector<8xf32>
    %62 = vector.multi_reduction <maximumf>, %58, %cst_37 [1] : vector<8x16xf32> to vector<8xf32>
    %63 = vector.shape_cast %62 : vector<8xf32> to vector<8x1xf32>
    %64 = vector.broadcast %63 : vector<8x1xf32> to vector<8x16xf32>
    %65 = arith.subf %58, %64 : vector<8x16xf32>
    %66 = math.exp %65 : vector<8x16xf32>
    %cst_38 = arith.constant dense<0.000000e+00> : vector<8xf32>
    %67 = vector.multi_reduction <add>, %66, %cst_38 [1] : vector<8x16xf32> to vector<8xf32>
    %68 = vector.shape_cast %67 : vector<8xf32> to vector<8x1xf32>
    %69 = tpu.reciprocal %68 {approx = true} : vector<8x1xf32> -> vector<8x1xf32>
    %70 = vector.broadcast %69 : vector<8x1xf32> to vector<8x16xf32>
    %71 = arith.mulf %66, %70 : vector<8x16xf32>
    %72 = vector.extract_strided_slice %13 {offsets = [0, 16], sizes = [16, 8], strides = [1, 1]} : vector<16x32xf32> to vector<16x8xf32>
    %cst_39 = arith.constant dense<0.000000e+00> : vector<8x8xf32>
    %73 = tpu.matmul %71, %72, %cst_39 {dimension_numbers = #tpu.dot_dimension_numbers<[1], [0], [0], [1], [0, 0, 1, 1], [], []>} : vector<8x16xf32>, vector<16x8xf32>, vector<8x8xf32> -> vector<8x8xf32>
    %c0_40 = arith.constant 0 : index
    %c0_41 = arith.constant 0 : index
    %c16 = arith.constant 16 : index
    %74 = vector.load %arg10[%c0_40, %c0_41, %c16] : memref<1x8x32xf32, #tpu.memory_space<vmem>>, vector<1x8x8xf32>
    %75 = vector.shape_cast %74 : vector<1x8x8xf32> to vector<8x8xf32>
    %76 = vector.shape_cast %73 : vector<8x8xf32> to vector<1x8x8xf32>
    tpu.vector_store %arg10[%c0_40, %c0_41, %c16], %76 {strides = array<i32>} : memref<1x8x32xf32, #tpu.memory_space<vmem>>, vector<1x8x8xf32>,
    %77 = vector.extract_strided_slice %11 {offsets = [0, 24], sizes = [8, 8], strides = [1, 1]} : vector<8x32xf32> to vector<8x8xf32>
    %78 = vector.extract_strided_slice %12 {offsets = [0, 24], sizes = [16, 8], strides = [1, 1]} : vector<16x32xf32> to vector<16x8xf32>
    %cst_42 = arith.constant dense<0.000000e+00> : vector<8x16xf32>
    %79 = tpu.matmul %77, %78, %cst_42 {dimension_numbers = #tpu.dot_dimension_numbers<[1], [1], [0], [0], [0, 0, 1, 0], [], []>} : vector<8x8xf32>, vector<16x8xf32>, vector<8x16xf32> -> vector<8x16xf32>
    %c0_43 = arith.constant 0 : index
    %c3 = arith.constant 3 : index
    %c0_44 = arith.constant 0 : index
    %c0_45 = arith.constant 0 : index
    %80 = vector.load %arg11[%c0_43, %c3, %c0_44, %c0_45] : memref<1x4x8x16xf32, #tpu.memory_space<vmem>>, vector<1x1x8x16xf32>
    %81 = vector.shape_cast %80 : vector<1x1x8x16xf32> to vector<8x16xf32>
    %82 = vector.shape_cast %79 : vector<8x16xf32> to vector<1x1x8x16xf32>
    tpu.vector_store %arg11[%c0_43, %c3, %c0_44, %c0_45], %82 {strides = array<i32>} : memref<1x4x8x16xf32, #tpu.memory_space<vmem>>, vector<1x1x8x16xf32>,
    %cst_46 = arith.constant dense<0xFF800000> : vector<8xf32>
    %83 = vector.multi_reduction <maximumf>, %79, %cst_46 [1] : vector<8x16xf32> to vector<8xf32>
    %84 = vector.shape_cast %83 : vector<8xf32> to vector<8x1xf32>
    %85 = vector.broadcast %84 : vector<8x1xf32> to vector<8x16xf32>
    %86 = arith.subf %79, %85 : vector<8x16xf32>
    %87 = math.exp %86 : vector<8x16xf32>
    %cst_47 = arith.constant dense<0.000000e+00> : vector<8xf32>
    %88 = vector.multi_reduction <add>, %87, %cst_47 [1] : vector<8x16xf32> to vector<8xf32>
    %89 = vector.shape_cast %88 : vector<8xf32> to vector<8x1xf32>
    %90 = tpu.reciprocal %89 {approx = true} : vector<8x1xf32> -> vector<8x1xf32>
    %91 = vector.broadcast %90 : vector<8x1xf32> to vector<8x16xf32>
    %92 = arith.mulf %87, %91 : vector<8x16xf32>
    %93 = vector.extract_strided_slice %13 {offsets = [0, 24], sizes = [16, 8], strides = [1, 1]} : vector<16x32xf32> to vector<16x8xf32>
    %cst_48 = arith.constant dense<0.000000e+00> : vector<8x8xf32>
    %94 = tpu.matmul %92, %93, %cst_48 {dimension_numbers = #tpu.dot_dimension_numbers<[1], [0], [0], [1], [0, 0, 1, 1], [], []>} : vector<8x16xf32>, vector<16x8xf32>, vector<8x8xf32> -> vector<8x8xf32>
    %c0_49 = arith.constant 0 : index
    %c0_50 = arith.constant 0 : index
    %c24 = arith.constant 24 : index
    %95 = vector.load %arg10[%c0_49, %c0_50, %c24] : memref<1x8x32xf32, #tpu.memory_space<vmem>>, vector<1x8x8xf32>
    %96 = vector.shape_cast %95 : vector<1x8x8xf32> to vector<8x8xf32>
    %97 = vector.shape_cast %94 : vector<8x8xf32> to vector<1x8x8xf32>
    tpu.vector_store %arg10[%c0_49, %c0_50, %c24], %97 {strides = array<i32>} : memref<1x8x32xf32, #tpu.memory_space<vmem>>, vector<1x8x8xf32>,
    return
  }
  func.func @transform_0(%arg0: i32, %arg1: i32, %arg2: i32) -> (i32, i32, i32) {
    %c0_i32 = arith.constant 0 : i32
    %c0_i32_0 = arith.constant 0 : i32
    return %arg0, %arg2, %c0_i32 : i32, i32, i32
  }
  func.func @transform_1(%arg0: i32, %arg1: i32, %arg2: i32) -> (i32, i32, i32) {
    %c0_i32 = arith.constant 0 : i32
    %c0_i32_0 = arith.constant 0 : i32
    %c0_i32_1 = arith.constant 0 : i32
    return %arg0, %c0_i32, %c0_i32_0 : i32, i32, i32
  }
  func.func @transform_2(%arg0: i32, %arg1: i32, %arg2: i32) -> (i32, i32, i32) {
    %c0_i32 = arith.constant 0 : i32
    %c0_i32_0 = arith.constant 0 : i32
    %c0_i32_1 = arith.constant 0 : i32
    return %arg1, %c0_i32, %c0_i32_0 : i32, i32, i32
  }
  func.func @transform_3(%arg0: i32, %arg1: i32, %arg2: i32) -> (i32, i32, i32) {
    %c0_i32 = arith.constant 0 : i32
    %c0_i32_0 = arith.constant 0 : i32
    %c0_i32_1 = arith.constant 0 : i32
    return %arg1, %c0_i32, %c0_i32_0 : i32, i32, i32
  }
  func.func @transform_4(%arg0: i32, %arg1: i32, %arg2: i32) -> (i32, i32, i32) {
    %c0_i32 = arith.constant 0 : i32
    %c0_i32_0 = arith.constant 0 : i32
    %c0_i32_1 = arith.constant 0 : i32
    return %arg1, %c0_i32, %c0_i32_0 : i32, i32, i32
  }
  func.func @transform_5(%arg0: i32, %arg1: i32, %arg2: i32) -> (i32, i32, i32) {
    %c0_i32 = arith.constant 0 : i32
    %c0_i32_0 = arith.constant 0 : i32
    %c0_i32_1 = arith.constant 0 : i32
    return %arg1, %c0_i32, %c0_i32_0 : i32, i32, i32
  }
  func.func @transform_6(%arg0: i32, %arg1: i32, %arg2: i32) -> (i32, i32, i32) {
    %c0_i32 = arith.constant 0 : i32
    %c0_i32_0 = arith.constant 0 : i32
    %c0_i32_1 = arith.constant 0 : i32
    return %arg1, %c0_i32, %c0_i32_0 : i32, i32, i32
  }
  func.func @transform_7(%arg0: i32, %arg1: i32, %arg2: i32) -> (i32, i32, i32) {
    %c0_i32 = arith.constant 0 : i32
    return %arg0, %arg2, %arg1 : i32, i32, i32
  }
  func.func @transform_8(%arg0: i32, %arg1: i32, %arg2: i32) -> (i32, i32, i32, i32) {
    %c0_i32 = arith.constant 0 : i32
    %c0_i32_0 = arith.constant 0 : i32
    return %arg0, %arg1, %arg2, %c0_i32 : i32, i32, i32, i32
  }
}

</mosaic_0001>

<bundles_post_ra>
// kernel: tpu_custom_call.1
= control target key start
LH: loop header
LB: loop body
LE: loop exit
PB: predicated region body
PF: predicated region fallthrough
CT: control target
= control target key end

     0   :  { %s2183_s0 = inlined_call_operand.hbm [shape: f32[2,16,32], index: 0, kind: input, shape index: {}]   ;;  %s2184_s1 = inlined_call_operand.hbm [shape: f32[2,16,32], index: 1, kind: input, shape index: {}]   ;;  %s2185_s2 = inlined_call_operand.hbm [shape: f32[1,32,32], index: 2, kind: input, shape index: {}]   ;;  %s2186_s3 = inlined_call_operand.vmem [shape: f32[1,1,32], index: 3, kind: input, shape index: {}]   ;;  %s2187_s4 = inlined_call_operand.hbm [shape: f32[1,32,32], index: 4, kind: input, shape index: {}]   ;;  %s2188_s5 = inlined_call_operand.hbm [shape: f32[1,32,32], index: 5, kind: input, shape index: {}]   ;;  %s2189_s6 = inlined_call_operand.vmem [shape: f32[1,1,32], index: 6, kind: input, shape index: {}]   ;;  %s2190_s7 = inlined_call_operand.hbm [shape: f32[2,16,32], index: 7, kind: output, shape index: {0}]   ;;  %s2191_s8 = inlined_call_operand.hbm [shape: f32[2,4,16,16], index: 8, kind: output, shape index: {1}]  }
   0x1   :  { %2207 = sst [smem:[#allocation32_spill]] %s2183_s0 }
   0x2   :  { %2208 = sst [smem:[#allocation33_spill]] %s2185_s2 }
   0x3   :  { %2209 = sst [smem:[#allocation34_spill]] %s2187_s4 }
   0x4   :  { %2210 = sst [smem:[#allocation35_spill]] %s2188_s5 }
   0x5   :  { %2211 = sst [smem:[#allocation36_spill]] %s2190_s7 }
   0x6   :  { %2212 = sst [smem:[#allocation37_spill]] %s2191_s8 }
   0x7   :  { %14 = vsyncpa [#allocation5], 0 }
   0x8   :  { %16 = vsyncpa [#allocation5 + $0x1], 0 }
   0x9   :  { %17 = vsyncpa [#allocation8], 0 }
   0xa   :  { %19 = vsyncpa [#allocation8 + $0x1], 0 }
   0xb   :  { %20 = vsyncpa [#allocation11], 0 }
   0xc   :  { %21 = vsyncpa [#allocation6], 0 }
   0xd   :  { %23 = vsyncpa [#allocation6 + $0x1], 0 }
   0xe   :  { %24 = vsyncpa [#allocation15], 0 }
   0xf   :  { %26 = vsyncpa [#allocation15 + $0x1], 0  ;;  %s1809_s27 = smov 0   ;;  %s1811_s28 = smov 0  }
  0x10   :  { %s1813_s29 = smov 0   ;;  %s1815_s30 = smov 0  }
  0x11   :  { %s1817_s9 = smov 0   ;;  %s1819_s10 = smov 0  }
  0x12   :  { %s1821_s11 = smov 0   ;;  %s1823_s12 = smov 0  }
  0x13   :  { %s1825_s13 = smov 0   ;;  %s1827_s14 = smov 0  }
  0x14   :  { %s1829_s15 = smov 0  }
  0x15 LB: > { %2213 = sst [smem:[#allocation22_spill]] %s1721_s30  ;;  %s1865_s16 = sadd.s32 4294967295, %s1749_s15   ;;  %s1749_s15 = sphi %s1829_s15, %s32_s15   ;;  %s1745_s14 = sphi %s1827_s14, %s2262_s14   ;;  %s1741_s13 = sphi %s1825_s13, %s2254_s13   ;;  %s1737_s12 = sphi %s1823_s12, %s2261_s12   ;;  %s1733_s11 = sphi %s1821_s11, %s2253_s11   ;;  %s1729_s10 = sphi %s1819_s10, %s2252_s10   ;;  %s1725_s9 = sphi %s1817_s9, %s2260_s9   ;;  %s1721_s30 = sphi %s1815_s30, %s2259_s30   ;;  %s1717_s29 = sphi %s1813_s29, %s2258_s29   ;;  %s1713_s28 = sphi %s1811_s28, %s2257_s28   ;;  %s1709_s27 = sphi %s1809_s27, %s2256_s27  }
  0x16   : > { %2214 = sst [smem:[#allocation23_spill]] %s1729_s10  ;;  %p1184_p0 = scmp.ge.s32.totalorder %s1749_s15, 1 }
  0x17   : > { %2215 = sst [smem:[#allocation24_spill]] %s1737_s12  ;;  %p2197_p1 = scmp.eq.s32.totalorder %s1865_s16, 0 }
  0x18   : > { %2216 = sst [smem:[#allocation25_spill]] %s1741_s13  ;;  %p300_p2 = scmp.lt.s32.totalorder %s1749_s15, 5 }
  0x19   : > { %s2217_s2 = sld [smem:[#allocation33_spill]]  ;;  %s1751_s21 = smov [#allocation9]  }
  0x1a   : > { %p1873_p3 = pnand %p1184_p0, %p300_p2  ;;  %s316_s22 = sshll.u32 %s1751_s21, 4  ;;  %s317_s22 = int_to_ptr.vmem [resolvable:$true] %s316_s22 }
  0x1b   : > { %s2220_s4 = sld [smem:[#allocation34_spill]]  ;;  %s2192_s17 = smov 128  }
  0x1c   : > { %p1267_p4 = pneg %p1873_p3  ;;  %s2193_s18 = smov 8  }
  0x1d   : > { %s1754_s21 = smov [#allocation10]   ;;  %s2221_s5 = sld [smem:[#allocation35_spill]] }
  0x1e   : > { %p1881_p5 = pnand %p1267_p4, %p2197_p1  ;;  %s339_s24 = sshll.u32 %s1754_s21, 4  ;;  %s340_s24 = int_to_ptr.vmem [resolvable:$true] %s339_s24 }
  0x1f   : > { %s314_s19 = sshll.u32 %s2217_s2, 4  ;;  %s1183_s2 = sadd.s32 4294967294, %s1749_s15   ;;  %s315_s19 = int_to_ptr.hbm [resolvable:$true] %s314_s19 }
  0x20   : > { %1270 = dma.hbm_to_vmem [thread:$0]  (!%p1881_p5), %s315_s19, 512, %s317_s22, [#allocation8], %s2192_s17, %s2192_s17, %s2193_s18  }
  0x21   : > { %s337_s26 = sshll.u32 %s2220_s4, 4  ;;  %s1755_s19 = smov [#allocation12]   ;;  %s338_s26 = int_to_ptr.hbm [resolvable:$true] %s337_s26 }
  0x22   : > { %1273 = dma.hbm_to_vmem [thread:$0]  (!%p1881_p5), %s338_s26, 512, %s340_s24, [#allocation11], %s2192_s17, %s2192_s17, %s2193_s18  }
  0x23   : > { %s354_s4 = sshll.u32 %s2221_s5, 4  ;;  %s356_s22 = sshll.u32 %s1755_s19, 4  ;;  %s355_s4 = int_to_ptr.hbm [resolvable:$true] %s354_s4  ;;  %s357_s22 = int_to_ptr.vmem [resolvable:$true] %s356_s22 }
  0x24   : > { %1276 = dma.hbm_to_vmem [thread:$0]  (!%p1881_p5), %s355_s4, 512, %s357_s22, [#allocation11], %s2192_s17, %s2192_s17, %s2193_s18  }
  0x25   : > { %s44_s21 = sadd.s32 1, %s1741_s13  ;;  %s51_s25 = sadd.s32 1, %s1745_s14 }
  0x26   : > { %p45_p6 = scmp.ge.s32.totalorder %s44_s21, 2  ;;  %s60_s26 = sadd.s32 1, %s1729_s10 }
  0x27   : > { %p67_p7 = scmp.ne.s32.totalorder %s1729_s10, %s1725_s9  ;;  %p68_p8 = scmp.eq.s32.totalorder %s1749_s15, 0 }
  0x28   : > { %s2264_s21 = smov (%p45_p6, %s44_s21), 0  ;;  %s2266_s25 = smov (!%p45_p6, %s51_s25), %s1745_s14 }
  0x29   : > { %2222 = sst [smem:[#allocation26_spill]] %s2264_s21  ;;  %s56_s4 = ssub.s32 %s1741_s13, %s2264_s21 }
  0x2a   : > { %p1921_p9 = por %p68_p8, %p67_p7  ;;  %p53_p10 = scmp.ge.s32.totalorder %s2266_s25, 2 }
  0x2b   : > { %p2196_p11 = scmp.ne.s32.totalorder %s1725_s9, %s1721_s30  ;;  %s86_s24 = sadd.s32 1, %s1717_s29 }
  0x2c   : > { %p93_p12 = scmp.ne.s32.totalorder %s1717_s29, %s1713_s28  ;;  %s2268_s25 = smov (%p53_p10, %s2266_s25), 0 }
  0x2d   : > { %2224 = sst [smem:[#allocation27_spill]] %s2268_s25  ;;  %p1937_p13 = por %p2197_p1, %p2196_p11 }
  0x2e   : > { %p1941_p0 = por %p93_p12, %p68_p8  ;;  %s55_s17 = ssub.s32 %s1745_s14, %s2268_s25 }
  0x2f   : > { %p99_p2 = scmp.ne.s32.totalorder %s1713_s28, %s1709_s27  ;;  %s57_s18 = sor.u32 %s56_s4, %s55_s17 }
  0x30   : > { %p84_p4 = scmp.eq.s32.totalorder %s55_s17, 0  ;;  %p58_p5 = scmp.eq.s32.totalorder %s57_s18, 0 }
  0x31   : > { %p1951_p6 = por %p99_p2, %p2197_p1  ;;  %p257_p8 = scmp.eq.s32.totalorder %s1865_s16, 3 }
  0x32   : > { %s1956_s21 = scalar_select %p84_p4, %s1717_s29, %s86_s24  }
  0x33   : > { %s1959_s7 = scalar_select %p58_p5, %s1729_s10, %s60_s26  }
  0x34   : > { %2228 = sst [smem:[#allocation28_spill]] %s1956_s21  ;;  %p263_p10 = scmp.eq.s32.totalorder %s1183_s2, 3 }
  0x35   : > { %2229 = sst [smem:[#allocation29_spill]] %s1959_s7  ;;  %p1294_p12 = scmp.lt.s32.totalorder %s1749_s15, 4 }
  0x36   : > { %s376_s27 = sand.u32 1, %s1729_s10   ;;  %p1967_p11 = por %p257_p8, %p67_p7 }
  0x37   : > { %p2232_p2 = scmp.ne.s32.totalorder %s1725_s9, %s1721_s30  ;;  %s1191_s26 = sshll.u32 %s376_s27, 3 }
  0x38   : > { %s2230_s17 = scalar_select %p1967_p11, 1, 0 }
  0x39   : > { %p1974_p1 = por %p263_p10, %p2232_p2  ;;  %s1192_s4 = sshll.u32 %s1745_s14, 1 }
  0x3a   : > { %2231 = sst [smem:[#allocation30_spill]] %s2230_s17  ;;  %s384_s24 = sadd.s32 %s1741_s13, %s1192_s4 }
  0x3b   : > { %s2233_s18 = scalar_select %p1974_p1, 1, 0 }
  0x3c   : > { %s380_s25 = scalar_lea.vmem [#allocation4], %s1191_s26  ;;  %s1193_s7 = sshll.u32 %s384_s24, 3 }
  0x3d   : > { %2234 = sst [smem:[#allocation31_spill]] %s2233_s18  ;;  %s390_s2 = sshll.u32 %s380_s25, 4  ;;  %s391_s2 = int_to_ptr.vmem [resolvable:$true] %s390_s2 }
  0x3e   : > { %s2235_s0 = sld [smem:[#allocation32_spill]]  ;;  %p1278_p7 = pnand %p1294_p12, %p1921_p9 }
  0x3f   : > { %p1991_p4 = pnand %p1294_p12, %p1941_p0  ;;  %s377_s26 = scalar_lea.sflag [#allocation5], %s376_s27 }
  0x40   : > { %s397_s25 = sand.u32 1, %s1749_s15   ;;  %s399_s4 = sand.u32 1, %s1717_s29  }
  0x41   : > { %s1194_s24 = sshll.u32 %s399_s4, 4  ;;  %s1238_s13 = sshll.u32 %s1745_s14, 4 }
  0x42   : > { %s406_s21 = scalar_lea.hbm %s2184_s1, %s1238_s13  ;;  %s2237_s17 = smov 8  }
  0x43   : > { %s407_s23 = sshll.u32 %s406_s21, 4  ;;  %s2238_s12 = smov 128   ;;  %s408_s23 = int_to_ptr.hbm [resolvable:$true] %s407_s23 }
  0x44   : > { %s386_s8 = scalar_lea.hbm %s2235_s0, %s1193_s7  ;;  %s398_s0 = scalar_lea.sflag [#allocation8], %s397_s25 }
  0x45   : > { %s388_s30 = sshll.u32 %s386_s8, 4  ;;  %s401_s8 = scalar_lea.vmem [#allocation7], %s1194_s24  ;;  %s389_s30 = int_to_ptr.hbm [resolvable:$true] %s388_s30 }
  0x46   : > { %1280 = dma.hbm_to_vmem [thread:$0]  (!%p1278_p7), %s389_s30, 128, %s391_s2, %s377_s26  }
  0x47   : > { %s409_s22 = sshll.u32 %s401_s8, 4  ;;  %421 = sbr.rel (%p1873_p3) target bundleno = 1171 (0x493), region = 48  ;;  %s410_s22 = int_to_ptr.vmem [resolvable:$true] %s409_s22 }
  0x48   : > { %1283 = dma.hbm_to_vmem [thread:$0]  (!%p1991_p4), %s408_s23, 256, %s410_s22, %s398_s0, %s2238_s12, %s2238_s12, %s2237_s17  }
  0x49   : > { %s2009_s30 = sand.u32 (!%p1873_p3), 1, %s1725_s9  }
  0x4a   : > { %s1198_s13 = sshll.u32 (!%p1873_p3), %s2009_s30, 3  ;;  %s424_s27 = scalar_lea.sflag (!%p1873_p3), [#allocation5], %s2009_s30 }
  0x4b   : > { %s2013_s2 = scalar_lea.vmem (!%p1873_p3), [#allocation4], %s1198_s13 }
  0x4c   : > { %1684 = dma.done.wait (%p1937_p13), %s424_s27, 128  }
  0x4d   : > { %1686 = vsyncadd (%p1937_p13), %s424_s27, 4294967168  ;;  %s433_s0 = sand.u32 1, %s1865_s16   ;;  %s435_s12 = sand.u32 1, %s1713_s28  }
  0x4e   : > { %s2021_s20 = sshll.u32 %s435_s12, 4  ;;  %s434_s17 = scalar_lea.sflag [#allocation8], %s433_s0 }
  0x4f   : > { %s437_s18 = scalar_lea.vmem [#allocation7], %s2021_s20 }
  0x50   : > { %1688 = dma.done.wait (%p1951_p6), %s434_s17, 256  }
  0x51   : > { %1690 = vsyncadd (%p1951_p6), %s434_s17, 4294967040  ;;  %p2239_p3 = scmp.eq.s32.totalorder %s1865_s16, 0 }
  0x53   : > { %1692 = dma.done.wait (%p2239_p3), [#allocation8], 512   ;;  %p2240_p9 = pmov %p2239_p3 }
  0x54   : > { %p2241_p13 = pmov %p2239_p3 }
  0x55   : > { %1694 = vsyncadd (%p2240_p9), [#allocation8], 4294966784 }
  0x56   : > { %1696 = dma.done.wait (%p2241_p13), [#allocation11], 1024   ;;  %p2242_p0 = pmov %p2239_p3 }
  0x57   : > { %s1204_s19 = sshll.u32 %s2009_s30, 5  ;;  %s2037_s26 = scalar_lea.vmem [#allocation13], %s1198_s13 }
  0x58   : > { %1698 = vsyncadd (%p2242_p0), [#allocation11], 4294966272  ;;  %s2039_s25 = scalar_lea.vmem [#allocation14], %s1204_s19  ;;  %p1205_p5 = scmp.ne.s32.totalorder %s1733_s11, 0 }
  0x5a   : > { %512 = sbr.rel (%p1205_p5) target bundleno = 238 (0xee), region = 72 }
  0x5f   : > { %v554_v0 = vld [vmem:[#allocation12 + $0x18] sm:$0xff]  ;;  %v553_v2 = vld [vmem:[#allocation12 + $0x10] sm:$0xff]  ;;  %v552_v4 = vld [vmem:[#allocation12 + $0x8] sm:$0xff]  ;;  %vm519_vm0 = vcmask 261120  }
  0x60   : > { %v518_v1 = vld [vmem:[#allocation10 + $0x18] sm:$0xff]  ;;  %1243 = vmatpush.msra.mxu3 %v554_v0  ;;  %v517_v3 = vld [vmem:[#allocation10 + $0x10] sm:$0xff]  ;;  %v516_v5 = vld [vmem:[#allocation10 + $0x8] sm:$0xff]  ;;  %571 = vmatpush.msra.mxu1 %v554_v0 }
  0x61   : > { %1239 = vmatpush.msra.mxu2 %v518_v1  ;;  %538 = vmatpush.msra.mxu0 %v518_v1  ;;  %v551_v6 = vld [vmem:[#allocation12] sm:$0xff]  ;;  %v514_v8 = vld [vmem:[%s437_s18 + $0x8] sm:$0xff]  ;;  %v1400_v10 = vld [vmem:[%s2189_s6] ss:$0 sm:$0xff] }
  0x62   : > { %1244 = vmatpush.msra.mxu3 %v553_v2  ;;  %v515_v7 = vld [vmem:[#allocation10] sm:$0xff]  ;;  %572 = vmatpush.msra.mxu1 %v553_v2 }
  0x63   : > { %1240 = vmatpush.msra.mxu2 %v517_v3  ;;  %539 = vmatpush.msra.mxu0 %v517_v3  ;;  %v513_v9 = vld [vmem:[%s437_s18] sm:$0xff] }
  0x64   : > { %1245 = vmatpush.msra.mxu3 %v552_v4  ;;  %573 = vmatpush.msra.mxu1 %v552_v4 }
  0x65   : > { %1241 = vmatpush.msra.mxu2 %v516_v5  ;;  %540 = vmatpush.msra.mxu0 %v516_v5 }
  0x66   : > { %1246 = vmatpush.msra.mxu3 %v551_v6  ;;  %574 = vmatpush.msra.mxu1 %v551_v6 }
  0x67   : > { %1242 = vmatpush.msra.mxu2 %v515_v7  ;;  %1209 = vmatmul.msk.f32.vlgmr.msra.gmra.mxu3 %vm519_vm0, %v514_v8 }
  0x68   : > { %1207 = vmatmul.msk.f32.vlgmr.msra.gmra.mxu2 %vm519_vm0, %v514_v8  ;;  %541 = vmatpush.msra.mxu0 %v515_v7 }
  0x69   : > { %1208 = vmatmul.msk.f32.vlgmr.msra.gmra.mxu1 %vm519_vm0, %v513_v9  ;;  %1206 = vmatmul.msk.f32.vlgmr.msra.gmra.mxu0 %vm519_vm0, %v513_v9 }
  0xe6   : > { %v576_v11 = vpop.f32.mrf.mxu1  ;;  %v543_v12 = vpop.f32.mrf.mxu0 }
  0xe7   : > { %v577_v13 = vadd.f32 %v1400_v10, %v576_v11  ;;  %549 = vst.msk [vmem:[#allocation2] sm:$0xff] %vm519_vm0, %v543_v12 }
  0xe9   : > { %582 = vst.msk [vmem:[#allocation3] sm:$0xff] %vm519_vm0, %v577_v13 }
  0xea   : > { %v579_v14 = vpop.f32.mrf.mxu3 }
  0xeb   : > { %v546_v15 = vpop.f32.mrf.mxu2  ;;  %v580_v16 = vadd.f32 %v1400_v10, %v579_v14 }
  0xec   : > { %550 = vst.msk [vmem:[#allocation2 + $0x8] sm:$0xff] %vm519_vm0, %v546_v15 }
  0xed   : > { %583 = vst.msk [vmem:[#allocation3 + $0x8] sm:$0xff] %vm519_vm0, %v580_v16 }
  0xee PF: > { %v588_v17 = vld [vmem:[#allocation9 + $0x18] sm:$0xff]  ;;  %v587_v18 = vld [vmem:[#allocation9 + $0x10] sm:$0xff]  ;;  %vm621_vm1 = vcmask 64512   ;;  %v586_v20 = vld [vmem:[#allocation9 + $0x8] sm:$0xff]  ;;  %s1756_s4 = smov 120   ;;  %s1757_s24 = smov 104  }
  0xef   : > { %609 = vmatpush.msra.mxu0 %v588_v17  ;;  %v617_v21 = vld [vmem:[#allocation2] sm:$0xff]  ;;  %v585_v22 = vld [vmem:[#allocation9] sm:$0xff]  ;;  %vm593_vm2 = vcmask 261120   ;;  %s1758_s10 = smov 112   ;;  %vm651_vm3 = vcmask 130048   ;;  %s2243_s23 = sld [smem:[#allocation24_spill]] }
  0xf0   : > { %852 = vrot.lane.b32.xlu2 %v617_v21, %s1757_s24  ;;  %v584_v23 = vld [vmem:[%s2013_s2] sm:$0xff]  ;;  %v619_v50 = vld [vmem:[#allocation3] sm:$0xff]  ;;  %s1759_s13 = smov 8   ;;  %s2245_s20 = sld [smem:[#allocation37_spill]] }
  0xf1   : > { %610 = vmatpush.msra.mxu0 %v587_v18  ;;  %v1416_v24 = vld [vmem:[%s2186_s3] ss:$0 sm:$0xff]  ;;  %s969_s18 = sshll.u32 %s2039_s25, 4  ;;  %s1760_s5 = smov 24   ;;  %s970_s18 = int_to_ptr.vmem [resolvable:$true] %s969_s18 }
  0xf2   : > { %s936_s16 = scalar_lea.sflag [#allocation15], %s2009_s30 }
  0xf3   : > { %v618_v19 = vld [vmem:[#allocation2 + $0x8] sm:$0xff]  ;;  %611 = vmatpush.msra.mxu0 %v586_v20 }
  0xf4   : > { %692 = vrot.lane.b32.xlu0 %v618_v19, %s1756_s4  ;;  %1211 = vmatpush.xpose.msk.msra.mxu1 %vm621_vm1, %v618_v19  ;;  %v620_v49 = vld [vmem:[#allocation3 + $0x8] sm:$0xff] }
  0xf5   : > { %612 = vmatpush.msra.mxu0 %v585_v22  ;;  %681 = vmatpush.msra.mxu2 %v620_v49  ;;  %v1411_v56 = vpack.i.bf16 %v619_v50, %v620_v49  ;;  %s1234_s8 = sshll.u32 %s2243_s23, 3 }
  0xf6   : > { %1210 = vmatmul.msk.f32.vlgmr.msra.gmra.mxu0 %vm593_vm2, %v584_v23  ;;  %s966_s22 = sadd.s32 %s1733_s11, %s1234_s8  ;;  %s1603_s21 = scalar_lea.hbm %s2245_s20, 128 }
  0xf7   : > { %682 = vmatpush.msra.mxu2 %v619_v50  ;;  %s1235_s2 = sshll.u32 %s966_s22, 3 }
  0xf8   : > { %1212 = vmatpush.xpose.msk.msra.mxu1 %vm621_vm1, %v617_v21  ;;  %s968_s17 = scalar_lea.hbm %s2245_s20, %s1235_s2 }
  0xf9   : > { %s971_s19 = sshll.u32 %s968_s17, 4  ;;  %s972_s19 = int_to_ptr.hbm [resolvable:$true] %s971_s19 }
  0xfc   : > { %690 = vrot.lane.b32.xlu0 %v617_v21, %s1756_s4 }
 0x104   : > { %774 = vrot.lane.b32.xlu0 %v618_v19, %s1758_s10 }
 0x14a   : > { %v853_v30 = vpop.permute.xlu2 %852 }
 0x166   : > { %v693_v27 = vpop.permute.xlu0 %692 }
 0x167   : > { %1215 = vmatpush.xpose.msk.msra.mxu3 %vm621_vm1, %v693_v27 }
 0x16e   : > { %v691_v28 = vpop.permute.xlu0 %690 }
 0x16f   : > { %1216 = vmatpush.xpose.msk.msra.mxu3 %vm621_vm1, %v691_v28 }
 0x173   : > { %v614_v25 = vpop.f32.mrf.mxu0 }
 0x174   : > { %v615_v26 = vadd.f32 %v1416_v24, %v614_v25 }
 0x176   : > { %850 = vrot.lane.b32.xlu2 %v615_v26, %s1757_s24  ;;  %688 = vrot.lane.b32.xlu1 %v615_v26, %s1756_s4  ;;  %v775_v29 = vpop.permute.xlu0 %774 }
 0x177   : > { %1213 = vmatmul.msk.f32.vlgmr.msra.gmra.mxu1 %vm621_vm1, %v615_v26  ;;  %1220 = vmatpush.xpose.msk.msrb.mxu0 %vm621_vm1, %v775_v29 }
 0x17e   : > { %770 = vrot.lane.b32.xlu2 %v615_v26, %s1758_s10  ;;  %854 = vrot.lane.b32.xlu1 %v618_v19, %s1757_s24 }
 0x186   : > { %772 = vrot.lane.b32.xlu1 %v617_v21, %s1758_s10 }
 0x1d0   : > { %v851_v33 = vpop.permute.xlu2 %850 }
 0x1d8   : > { %v771_v37 = vpop.permute.xlu2 %770 }
 0x1e8   : > { %v689_v31 = vpop.permute.xlu1 %688 }
 0x1e9   : > { %1217 = vmatmul.msk.f32.vlgmr.msra.gmra.mxu3 %vm621_vm1, %v689_v31 }
 0x1f0   : > { %v855_v32 = vpop.permute.xlu1 %854 }
 0x1f1   : > { %1225 = vmatpush.xpose.msk.msrb.mxu3 %vm621_vm1, %v855_v32 }
 0x1f4   : > { %v648_v34 = vpop.f32.mrf.mxu1 }
 0x1f5   : > { %652 = vst.msk [vmem:[%s2039_s25] sm:$0xff] %vm651_vm3, %v648_v34  ;;  %1226 = vmatpush.xpose.msk.msrb.mxu3 %vm621_vm1, %v853_v30  ;;  %v653_v35 = vsel %vm651_vm3, %v648_v34, -inf }
 0x1f6   : > { %654 = vmax.xlane.f32.xlu0 %v653_v35 }
 0x1f8   : > { %1227 = vmatmul.msk.f32.vlgmr.msrb.gmra.mxu3 %vm621_vm1, %v851_v33  ;;  %v773_v36 = vpop.permute.xlu1 %772 }
 0x1f9   : > { %1221 = vmatpush.xpose.msk.msrb.mxu0 %vm621_vm1, %v773_v36 }
 0x1fc   : > { %1222 = vmatmul.msk.f32.vlgmr.msrb.gmra.mxu0 %vm621_vm1, %v771_v37 }
 0x269   : > { %v655_v38 = vpop.xlane.xlu0 %654 }
 0x26a   : > { %v656_v39 = vsub.f32 %v648_v34, %v655_v38 }
 0x26c   : > { %v657_v40 = vmul.f32 1.442695, %v656_v39  ;;  %v717_v41 = vpop.f32.mrf.mxu3 }
 0x26d   : > { %1218 = vst.msk [vmem:[%s2039_s25 + $0x8] sm:$0xff] %vm651_vm3, %v717_v41  ;;  %v722_v42 = vsel %vm651_vm3, %v717_v41, -inf }
 0x26e   : > { %1417 = vpow2.f32 %v657_v40  ;;  %723 = vmax.xlane.f32.xlu1 %v722_v42 }
 0x274   : > { %v1418_v43 = vpop.eup %1417 }
 0x275   : > { %v659_v44 = vsel %vm651_vm3, %v1418_v43, 0.0 }
 0x276   : > { %660 = vadd.xlane.f32.xlu0 %v659_v44 }
 0x279   : > { %v799_v45 = vpop.f32.mrf.mxu0 }
 0x27a   : > { %1223 = vst.msk [vmem:[%s2039_s25 + $0x10] sm:$0xff] %vm651_vm3, %v799_v45  ;;  %v804_v48 = vsel %vm651_vm3, %v799_v45, -inf }
 0x27b   : > { %v879_v46 = vpop.f32.mrf.mxu3 }
 0x27c   : > { %1228 = vst.msk [vmem:[%s2039_s25 + $0x18] sm:$0xff] %vm651_vm3, %v879_v46  ;;  %v884_v47 = vsel %vm651_vm3, %v879_v46, -inf }
 0x27d   : > { %885 = vmax.xlane.f32.xlu2 %v884_v47 }
 0x285   : > { %805 = vmax.xlane.f32.xlu2 %v804_v48 }
 0x29d   : > { %1402 = vrot.lane.b32.xlu2 %v1411_v56, %s1756_s4  ;;  %s1597_s4 = sshra.s32 %s972_s19, 4  ;;  %s1598_s4 = int_to_ptr.hbm [resolvable:$true] %s1597_s4 }
 0x29e   : > { %p1604_p12 = scmp.lt.s32.totalorder %s1598_s4, %s2245_s20 }
 0x2e1   : > { %v724_v58 = vpop.xlane.xlu1 %723 }
 0x2e2   : > { %v725_v62 = vsub.f32 %v717_v41, %v724_v58 }
 0x2e4   : > { %v726_v1 = vmul.f32 1.442695, %v725_v62 }
 0x2e9   : > { %v661_v51 = vpop.xlane.xlu0 %660 }
 0x2ea   : > { %1419 = vrcp.f32 %v661_v51 }
 0x2f0   : > { %v1420_v52 = vpop.eup %1419  ;;  %v886_v53 = vpop.xlane.xlu2 %885 }
 0x2f1   : > { %v887_v54 = vsub.f32 %v879_v46, %v886_v53  ;;  %v663_v55 = vmul.f32 %v1420_v52, %v1418_v43 }
 0x2f3   : > { %v888_v57 = vmul.f32 1.442695, %v887_v54  ;;  %1214 = vmatmul.msk.f32.vlgmr.msra.gmra.mxu2 %vm651_vm3, %v663_v55 }
 0x2f5   : > { %1421 = vpow2.f32 %v888_v57 }
 0x2f8   : > { %v806_v59 = vpop.xlane.xlu2 %805 }
 0x2f9   : > { %v807_v60 = vsub.f32 %v799_v45, %v806_v59 }
 0x2fb   : > { %v1422_v61 = vpop.eup %1421  ;;  %v808_v63 = vmul.f32 1.442695, %v807_v60 }
 0x2fc   : > { %v890_v0 = vsel %vm651_vm3, %v1422_v61, 0.0 }
 0x2fd   : > { %1423 = vpow2.f32 %v808_v63  ;;  %891 = vadd.xlane.f32.xlu0 %v890_v0 }
 0x2fe   : > { %1425 = vpow2.f32 %v726_v1 }
 0x300   : > { %v1403_v6 = vpop.permute.xlu2 %1402 }
 0x301   : > { %v1404_v7 = vunpack.i.l.bf16 %v1403_v6  ;;  %v1405_v8 = vunpack.i.h.bf16 %v1403_v6 }
 0x303   : > { %v1424_v2 = vpop.eup %1423  ;;  %758 = vmatpush.msrb.mxu2 %v1404_v7 }
 0x304   : > { %v810_v3 = vsel %vm651_vm3, %v1424_v2, 0.0  ;;  %v1426_v4 = vpop.eup %1425 }
 0x305   : > { %811 = vadd.xlane.f32.xlu1 %v810_v3  ;;  %v728_v5 = vsel %vm651_vm3, %v1426_v4, 0.0  ;;  %759 = vmatpush.msrb.mxu2 %v1405_v8 }
 0x30d   : > { %729 = vadd.xlane.f32.xlu1 %v728_v5 }
 0x311   : > { %1407 = vrot.lane.b32.xlu0 %v1411_v56, %s1757_s24  ;;  %s1599_s24 = scalar_lea.hbm %s1598_s4, 32 }
 0x312   : > { %p1600_p6 = scmp.ne.s32.totalorder %s1598_s4, %s1599_s24  ;;  %p1605_p2 = scmp.lt.s32.totalorder %s1603_s21, %s1599_s24 }
 0x314   : > { %p1601_p8 = pnand %p1600_p6, %p1967_p11  ;;  %p1606_p7 = por %p1605_p2, %p1604_p12 }
 0x316   : > { %p1602_p10 = pneg %p1601_p8 }
 0x318   : > { %p1607_p4 = pnand %p1606_p7, %p1602_p10 }
 0x326   : > { %1412 = vrot.lane.b32.xlu1 %v1411_v56, %s1758_s10 }
 0x370   : > { %v892_v11 = vpop.xlane.xlu0 %891 }
 0x376   : > { %v684_v9 = vpop.f32.mrf.mxu2 }
 0x377   : > { %687 = vst.msk [vmem:[%s2037_s26] sm:$0xff] %vm621_vm1, %v684_v9 }
 0x378   : > { %v812_v10 = vpop.xlane.xlu1 %811 }
 0x380   : > { %v730_v12 = vpop.xlane.xlu1 %729 }
 0x381   : > { %1427 = vrcp.f32 %v730_v12 }
 0x382   : > { %1429 = vrcp.f32 %v892_v11 }
 0x383   : > { %v1408_v13 = vpop.permute.xlu0 %1407  ;;  %1431 = vrcp.f32 %v812_v10 }
 0x384   : > { %v1410_v14 = vunpack.i.h.bf16 %v1408_v13  ;;  %v1409_v15 = vunpack.i.l.bf16 %v1408_v13 }
 0x386   : > { %918 = vmatpush.msra.mxu2 %v1409_v15 }
 0x387   : > { %v1428_v16 = vpop.eup %1427 }
 0x388   : > { %v732_v17 = vmul.f32 %v1428_v16, %v1426_v4  ;;  %919 = vmatpush.msra.mxu2 %v1410_v14  ;;  %v1430_v18 = vpop.eup %1429 }
 0x389   : > { %v894_v19 = vmul.f32 %v1430_v18, %v1422_v61  ;;  %v1432_v21 = vpop.eup %1431 }
 0x38a   : > { %1219 = vmatmul.msk.f32.vlgmr.msrb.gmra.mxu2 %vm651_vm3, %v732_v17  ;;  %v814_v24 = vmul.f32 %v1432_v21, %v1424_v2 }
 0x392   : > { %1229 = vmatmul.msk.f32.vlgmr.msra.gmra.mxu2 %vm651_vm3, %v894_v19 }
 0x398   : > { %v1413_v20 = vpop.permute.xlu1 %1412 }
 0x399   : > { %v1414_v22 = vunpack.i.l.bf16 %v1413_v20  ;;  %v1415_v23 = vunpack.i.h.bf16 %v1413_v20 }
 0x39b   : > { %838 = vmatpush.msrb.mxu1 %v1414_v22 }
 0x39d   : > { %839 = vmatpush.msrb.mxu1 %v1415_v23 }
 0x39e   : > { %1224 = vmatmul.msk.f32.vlgmr.msrb.gmra.mxu1 %vm651_vm3, %v814_v24 }
 0x40d   : > { %v761_v25 = vpop.f32.mrf.mxu2 }
 0x40e   : > { %765 = vrot.lane.b32.xlu2 %v761_v25, %s1759_s13 }
 0x415   : > { %v921_v26 = vpop.f32.mrf.mxu2 }
 0x416   : > { %925 = vrot.lane.b32.xlu2 %v921_v26, %s1760_s5 }
 0x417   : > { %1610 = shalt.err (!%p1607_p4)
}
 0x418   : > { %s1761_s22 = smov 128   ;;  %s1762_s2 = smov 256   ;;  %vm768_vm4 = vcmask 130112   ;;  %vm848_vm5 = vcmask 195712   ;;  %vm928_vm6 = vcmask 261312  }
 0x419   : > { %1264 = dma.vmem_to_hbm [thread:$0]  (%p1967_p11), %s970_s18, 512, %s972_s19, %s936_s16, %s1761_s22, %s1762_s2, %s1759_s13  }
 0x41a   : > { %s1763_s0 = smov 16   ;;  %s1232_s12 = sshll.u32 %s2243_s23, 1 }
 0x41b   : > { %v841_v27 = vpop.f32.mrf.mxu1  ;;  %s947_s17 = sadd.s32 %s1733_s11, %s1232_s12  ;;  %s2246_s10 = sld [smem:[#allocation36_spill]] }
 0x41c   : > { %845 = vrot.lane.b32.xlu0 %v841_v27, %s1763_s0  ;;  %s1233_s5 = sshll.u32 %s947_s17, 3  ;;  %s951_s8 = sshll.u32 %s2037_s26, 4  ;;  %s952_s8 = int_to_ptr.vmem [resolvable:$true] %s951_s8 }
 0x41d   : > { %s931_s13 = scalar_lea.sflag [#allocation6], %s2009_s30 }
 0x421   : > { %s2247_s7 = smov %s2246_s10  ;;  %s949_s21 = scalar_lea.hbm %s2246_s10, %s1233_s5 }
 0x422   : > { %s953_s25 = sshll.u32 %s949_s21, 4  ;;  %s1631_s16 = scalar_lea.hbm %s2247_s7, 32  ;;  %s954_s25 = int_to_ptr.hbm [resolvable:$true] %s953_s25 }
 0x423   : > { %s1625_s18 = sshra.s32 %s954_s25, 4  ;;  %s1626_s18 = int_to_ptr.hbm [resolvable:$true] %s1625_s18 }
 0x424   : > { %s1627_s11 = scalar_lea.hbm %s1626_s18, 8  ;;  %p1632_p0 = scmp.lt.s32.totalorder %s1626_s18, %s2247_s7 }
 0x425   : > { %p1628_p3 = scmp.ne.s32.totalorder %s1626_s18, %s1627_s11  ;;  %p1633_p5 = scmp.lt.s32.totalorder %s1631_s16, %s1627_s11 }
 0x427   : > { %p1629_p9 = pnand %p1628_p3, %p1967_p11  ;;  %p1634_p6 = por %p1633_p5, %p1632_p0 }
 0x429   : > { %p1630_p13 = pneg %p1629_p9 }
 0x42b   : > { %p1635_p8 = pnand %p1634_p6, %p1630_p13 }
 0x468   : > { %v766_v28 = vpop.permute.xlu2 %765 }
 0x469   : > { %769 = vst.msk [vmem:[%s2037_s26] sm:$0xff] %vm768_vm4, %v766_v28 }
 0x470   : > { %v926_v30 = vpop.permute.xlu2 %925 }
 0x48e   : > { %v846_v29 = vpop.permute.xlu0 %845 }
 0x48f   : > { %849 = vst.msk [vmem:[%s2037_s26] sm:$0xff] %vm848_vm5, %v846_v29 }
 0x490   : > { %929 = vst.msk [vmem:[%s2037_s26] sm:$0xff] %vm928_vm6, %v926_v30 }
 0x491   : > { %1638 = shalt.err (!%p1635_p8)
}
 0x492   : > { %1263 = dma.vmem_to_hbm [thread:$0]  (%p1967_p11), %s952_s8, 128, %s954_s25, %s931_s13  }
 0x493 PF: > { %s2248_s30 = sld [smem:[#allocation22_spill]]  ;;  %p1298_p10 = scmp.ge.s32.totalorder %s1749_s15, 2 }
 0x495   : > { %p1285_p12 = pnand %p1298_p10, %p1974_p1 }
 0x497   : > { %p1286_p2 = pneg %p1285_p12 }
 0x499   : > { %s986_s0 = sand.u32 1, %s2248_s30  }
 0x49a   : > { %s987_s12 = scalar_lea.sflag [#allocation6], %s986_s0 }
 0x49b   : > { %1700 = dma.done.wait (%p1286_p2), %s987_s12, 128  }
 0x49c   : > { %1702 = vsyncadd (%p1286_p2), %s987_s12, 4294967168  ;;  %s997_s17 = scalar_lea.sflag [#allocation15], %s986_s0 }
 0x49d   : > { %1704 = dma.done.wait (%p1286_p2), %s997_s17, 512  }
 0x49e   : > { %1706 = vsyncadd (%p1286_p2), %s997_s17, 4294966784  ;;  %s32_s15 = sadd.s32 1, %s1749_s15   ;;  %s2250_s5 = sld [smem:[#allocation28_spill]] }
 0x49f   : > { %p29_p7 = scmp.ge.s32.totalorder %s32_s15, 6   ;;  %s2251_s4 = sld [smem:[#allocation23_spill]] }
 0x4a0   : > { %s2252_s10 = sld [smem:[#allocation29_spill]]  ;;  %s2256_s27 = smov %s1713_s28 }
 0x4a1   : > { %s2253_s11 = sld [smem:[#allocation25_spill]]  ;;  %s2257_s28 = smov %s1717_s29 }
 0x4a2   : > { %s2254_s13 = sld [smem:[#allocation26_spill]]  ;;  %s2259_s30 = smov %s1725_s9 }
 0x4a3   : > { %s2255_s24 = sld [smem:[#allocation27_spill]]  ;;  %s2261_s12 = smov %s1745_s14 }
 0x4a4   : > { %s2258_s29 = smov %s2250_s5 }
 0x4a5   : > { %s2260_s9 = smov %s2251_s4  ;;  %31 = sbr.rel (!%p29_p7) target bundleno = 21 (0x15), region = 151 }
 0x4a9   : > { %s2262_s14 = smov %s2255_s24 }
 0x4aa   :  { %1003 = vsyncpa [#allocation5], 1 }
 0x4ab   :  { %1005 = vsyncpa [#allocation5 + $0x1], 1 }
 0x4ac   :  { %1006 = vsyncpa [#allocation8], 1 }
 0x4ad   :  { %1008 = vsyncpa [#allocation8 + $0x1], 1 }
 0x4ae   :  { %1009 = vsyncpa [#allocation11], 1 }
 0x4af   :  { %1010 = vsyncpa [#allocation6], 1 }
 0x4b0   :  { %1012 = vsyncpa [#allocation6 + $0x1], 1 }
 0x4b1   :  { %1013 = vsyncpa [#allocation15], 1 }
 0x4b2   :  { %1015 = vsyncpa [#allocation15 + $0x1], 1 }

</bundles_post_ra>
